<compile_context>
chip_gen: v5e
topology: v5e:2x2
jax: 0.10.0
libtpu: 0.0.40
codegen_flags: <defaults>
</compile_context>

<pallas_src>
import jax
import jax.numpy as jnp
from jax import lax
from jax.experimental import pallas as pl
from jax.experimental.pallas import tpu as pltpu


def _round_up(a, m):
    return (a + m - 1) // m * m


def _prototypes_kernel(x_ref, w_ref, o_ref, xn_ref):
    """Compute one (tm, tn) output tile.

    x_ref : (tm, D)   input rows                         (input dtype)
    w_ref : (tn, D)   prototype rows (native Linear layout, compute dtype)
    o_ref : (tm, tn)  output tile
    xn_ref: (tm, D)   VMEM scratch with the normalized rows (compute dtype)
    """
    # Normalize once per row tile; reuse across the whole sweep over j (N tiles).
    @pl.when(pl.program_id(1) == 0)
    def _():
        x = x_ref[...].astype(jnp.float32)
        sq = jnp.sum(x * x, axis=1, keepdims=True)
        # torch F.normalize(p=2, eps=1e-12): x / max(||x||, eps)
        #   == x * rsqrt(max(||x||^2, eps^2));   rsqrt runs on the EUP slot.
        inv = lax.rsqrt(jnp.maximum(sq, 1e-24))
        xn_ref[...] = (x * inv).astype(xn_ref.dtype)

    # x_n @ W^T without materializing a transpose: contract both operands on D.
    o_ref[...] = lax.dot_general(
        xn_ref[...],
        w_ref[...],
        dimension_numbers=(((1,), (1,)), ((), ())),
        preferred_element_type=jnp.float32,
    ).astype(o_ref.dtype)


def prototypes_forward(x, weight, *, tm=None, tn=None, compute_dtype=None):
    """Prototypes forward.

    x      : (B, n_input)
    weight : (n_out, n_input)  -- native nn.Linear weight layout (no transpose copy).
    """
    B, D = x.shape
    N, D2 = weight.shape
    assert D == D2, "feature dims of x and weight must match"

    if compute_dtype is None:
        # bf16 weights -> bf16 MXU inputs (f32 accumulation); f32 weights -> f32.
        compute_dtype = weight.dtype
    out_dtype = jnp.promote_types(x.dtype, weight.dtype)

    w = weight.astype(compute_dtype)
    itemsize = lambda dt: jnp.dtype(dt).itemsize

    # Pad rows to the sublane (8) and prototype count to the lane (128) so the
    # output tiles are lane-dense (unmasked stores).
    Bp = _round_up(B, 8)
    Np = _round_up(N, 128)

    # Tile selection against a conservative VMEM budget (double-buffered inputs
    # + output + x_n scratch) so default scoped VMEM / v7x's 64 MiB both fit.
    if tm is None:
        tm = min(Bp, 128)
    if tn is None:
        tn = min(Np, 512)

    def vmem_bytes(tm_, tn_):
        return (2 * (tm_ * D * itemsize(x.dtype)
                     + tn_ * D * itemsize(compute_dtype)
                     + tm_ * tn_ * itemsize(out_dtype))
                + tm_ * D * itemsize(compute_dtype))

    budget = 24 * 1024 * 1024
    while tn > 128 and vmem_bytes(tm, tn) > budget:
        tn = max(128, (tn // 2) // 128 * 128)
    while tm > 8 and vmem_bytes(tm, tn) > budget:
        tm = max(8, (tm // 2) // 8 * 8)

    Bp = _round_up(Bp, tm)
    Np = _round_up(Np, tn)

    x_p = jnp.pad(x, ((0, Bp - B), (0, 0))) if Bp != B else x
    w_p = jnp.pad(w, ((0, Np - N), (0, 0))) if Np != N else w

    grid = (Bp // tm, Np // tn)

    cost = pl.CostEstimate(
        flops=2 * Bp * D * Np,
        transcendentals=Bp,  # one rsqrt per row
        bytes_accessed=(Bp * D * itemsize(x.dtype)
                        + Np * D * itemsize(compute_dtype)
                        + Bp * Np * itemsize(out_dtype)),
    )

    out = pl.pallas_call(
        _prototypes_kernel,
        out_shape=jax.ShapeDtypeStruct((Bp, Np), out_dtype),
        grid_spec=pltpu.PrefetchScalarGridSpec(
            num_scalar_prefetch=0,
            grid=grid,
            in_specs=[
                # x row tile: block index depends only on i -> stays resident
                # in VMEM for the whole inner sweep over j.
                pl.BlockSpec((tm, D), lambda i, j: (i, 0)),
                # weight row tile: streamed (double-buffered) over j.
                pl.BlockSpec((tn, D), lambda i, j: (j, 0)),
            ],
            out_specs=pl.BlockSpec((tm, tn), lambda i, j: (i, j)),
            scratch_shapes=[pltpu.VMEM((tm, D), compute_dtype)],
        ),
        compiler_params=pltpu.CompilerParams(
            # i (rows) shardable across TensorCores (v7x megacore); j must run
            # sequentially so the cached normalized-x scratch stays valid.
            dimension_semantics=("parallel", "arbitrary"),
        ),
        cost_estimate=cost,
    )(x_p, w_p)

    return out[:B, :N]


if __name__ == "__main__":
    key = jax.random.PRNGKey(0)
    kx, kw = jax.random.split(key)

    def ref_forward(xx, ww):
        xn = xx / jnp.maximum(jnp.linalg.norm(xx, axis=1, keepdims=True), 1e-12)
        return xn @ ww.T

    # --- Test 1: small, tile-aligned (single tile) -------------------------
    B, D, N = 8, 128, 256
    x = jax.random.normal(kx, (B, D), dtype=jnp.float32)
    bound = 1.0 / jnp.sqrt(D)
    weight = jax.random.uniform(kw, (N, D), minval=-bound, maxval=bound,
                                dtype=jnp.float32)
    out = prototypes_forward(x, weight)
    jax.block_until_ready(out)
    assert out.shape == (B, N)
    assert jnp.allclose(out, ref_forward(x, weight), atol=1e-5, rtol=1e-5)

    # --- Test 2: multi-tile grid + padding (unaligned B, N) ----------------
    B2, D2, N2 = 20, 128, 300  # pads to (24, 128) rows / (128-mult) prototypes
    x2 = jax.random.normal(jax.random.PRNGKey(1), (B2, D2), dtype=jnp.float32)
    w2 = jax.random.uniform(jax.random.PRNGKey(2), (N2, D2),
                            minval=-bound, maxval=bound, dtype=jnp.float32)
    out2 = prototypes_forward(x2, w2, tm=8, tn=128)
    jax.block_until_ready(out2)
    assert out2.shape == (B2, N2)
    assert jnp.allclose(out2, ref_forward(x2, w2), atol=1e-5, rtol=1e-5)

    # --- Test 3: bf16 weights -> bf16 MXU with f32 accumulation ------------
    out3 = prototypes_forward(x2, w2.astype(jnp.bfloat16), tm=8, tn=128)
    jax.block_until_ready(out3)
    assert jnp.allclose(out3, ref_forward(x2, w2), atol=2e-2, rtol=2e-2)

    print("KERNEL_OK")
</pallas_src>

<mosaic_0001>
module attributes {stable_mosaic.version = 11 : i64} {
  func.func @_prototypes_kernel(%arg0: i32, %arg1: i32, %arg2: memref<8x128xf32, #tpu.memory_space<vmem>>, %arg3: memref<256x128xf32, #tpu.memory_space<vmem>>, %arg4: memref<8x256xf32, #tpu.memory_space<vmem>>, %arg5: memref<8x128xf32, #tpu.memory_space<vmem>>) attributes {dimension_semantics = [#tpu.dimension_semantics<parallel>, #tpu.dimension_semantics<arbitrary>], iteration_bounds = array<i64: 1, 1>, scalar_prefetch = 0 : i64, scratch_operands = 1 : i64, tpu.core_type = #tpu.core_type<tc>, window_params = [{transform_indices = @transform_0, window_bounds = array<i64: 8, 128>}, {transform_indices = @transform_1, window_bounds = array<i64: 256, 128>}, {transform_indices = @transform_2, window_bounds = array<i64: 8, 256>}]} {
    %c0_i32 = arith.constant 0 : i32
    %0 = arith.cmpi eq, %arg1, %c0_i32 : i32
    %1 = arith.extui %0 : i1 to i32
    %c0_i32_0 = arith.constant 0 : i32
    %2 = arith.cmpi ne, %1, %c0_i32_0 : i32
    scf.if %2 {
      %c0_6 = arith.constant 0 : index
      %c0_7 = arith.constant 0 : index
      %7 = vector.load %arg2[%c0_6, %c0_7] : memref<8x128xf32, #tpu.memory_space<vmem>>, vector<8x128xf32>
      %8 = arith.mulf %7, %7 : vector<8x128xf32>
      %cst_8 = arith.constant dense<0.000000e+00> : vector<8xf32>
      %9 = vector.multi_reduction <add>, %8, %cst_8 [1] : vector<8x128xf32> to vector<8xf32>
      %10 = vector.shape_cast %9 : vector<8xf32> to vector<8x1xf32>
      %cst_9 = arith.constant 1.000000e-24 : f32
      %11 = vector.broadcast %cst_9 : f32 to vector<8x1xf32>
      %12 = arith.maximumf %10, %11 : vector<8x1xf32>
      %13 = math.rsqrt %12 : vector<8x1xf32>
      %14 = vector.broadcast %13 : vector<8x1xf32> to vector<8x128xf32>
      %15 = arith.mulf %7, %14 : vector<8x128xf32>
      %c0_10 = arith.constant 0 : index
      %c0_11 = arith.constant 0 : index
      %16 = vector.load %arg5[%c0_10, %c0_11] : memref<8x128xf32, #tpu.memory_space<vmem>>, vector<8x128xf32>
      tpu.vector_store %arg5[%c0_10, %c0_11], %15 {strides = array<i32>} : memref<8x128xf32, #tpu.memory_space<vmem>>, vector<8x128xf32>,
    } else {
    }
    %c0 = arith.constant 0 : index
    %c0_1 = arith.constant 0 : index
    %3 = vector.load %arg5[%c0, %c0_1] : memref<8x128xf32, #tpu.memory_space<vmem>>, vector<8x128xf32>
    %c0_2 = arith.constant 0 : index
    %c0_3 = arith.constant 0 : index
    %4 = vector.load %arg3[%c0_2, %c0_3] : memref<256x128xf32, #tpu.memory_space<vmem>>, vector<256x128xf32>
    %cst = arith.constant dense<0.000000e+00> : vector<8x256xf32>
    %5 = tpu.matmul %3, %4, %cst {dimension_numbers = #tpu.dot_dimension_numbers<[1], [1], [0], [0], [0, 0, 1, 0], [], []>} : vector<8x128xf32>, vector<256x128xf32>, vector<8x256xf32> -> vector<8x256xf32>
    %c0_4 = arith.constant 0 : index
    %c0_5 = arith.constant 0 : index
    %6 = vector.load %arg4[%c0_4, %c0_5] : memref<8x256xf32, #tpu.memory_space<vmem>>, vector<8x256xf32>
    tpu.vector_store %arg4[%c0_4, %c0_5], %5 {strides = array<i32>} : memref<8x256xf32, #tpu.memory_space<vmem>>, vector<8x256xf32>,
    return
  }
  func.func @transform_0(%arg0: i32, %arg1: i32) -> (i32, i32) {
    %c0_i32 = arith.constant 0 : i32
    %c0_i32_0 = arith.constant 0 : i32
    return %arg0, %c0_i32 : i32, i32
  }
  func.func @transform_1(%arg0: i32, %arg1: i32) -> (i32, i32) {
    %c0_i32 = arith.constant 0 : i32
    %c0_i32_0 = arith.constant 0 : i32
    return %arg1, %c0_i32 : i32, i32
  }
  func.func @transform_2(%arg0: i32, %arg1: i32) -> (i32, i32) {
    %c0_i32 = arith.constant 0 : i32
    return %arg0, %arg1 : i32, i32
  }
}

</mosaic_0001>

<bundles_post_ra>
// kernel: tpu_custom_call.1
= control target key start
LH: loop header
LB: loop body
LE: loop exit
PB: predicated region body
PF: predicated region fallthrough
CT: control target
= control target key end

     0   :  { %7 = vsyncpa [#allocation4], 0  ;;  %s275_s0 = inlined_call_operand.hbm [shape: f32[8,128], index: 0, kind: input, shape index: {}]   ;;  %s276_s1 = inlined_call_operand.hbm [shape: f32[256,128], index: 1, kind: input, shape index: {}]   ;;  %s277_s2 = inlined_call_operand.hbm [shape: f32[8,256], index: 2, kind: output, shape index: {}]  }
   0x1   :  { %8 = vsyncpa [#allocation7], 0 }
   0x2   :  { %9 = vsyncpa [#allocation5], 0  ;;  %s15_s11 = sshll.u32 %s275_s0, 4  ;;  %s241_s12 = smov [#allocation3]   ;;  %s16_s11 = int_to_ptr.hbm [resolvable:$true] %s15_s11 }
   0x3   :  { %s17_s13 = sshll.u32 %s241_s12, 4  ;;  %s25_s16 = sshll.u32 %s276_s1, 4  ;;  %s18_s13 = int_to_ptr.vmem [resolvable:$true] %s17_s13  ;;  %s26_s16 = int_to_ptr.hbm [resolvable:$true] %s25_s16 }
   0x4   :  { %20 = dma.hbm_to_vmem [thread:$0]  %s16_s11, 128, %s18_s13, [#allocation4]  }
   0x5   :  { %s242_s17 = smov [#allocation6]   ;;  %s243_s19 = smov 128  }
   0x6   :  { %s27_s18 = sshll.u32 %s242_s17, 4  ;;  %s244_s20 = smov 8   ;;  %s28_s18 = int_to_ptr.vmem [resolvable:$true] %s27_s18 }
   0x7   :  { %33 = dma.hbm_to_vmem [thread:$0]  %s26_s16, 4096, %s28_s18, [#allocation7], %s243_s19, %s243_s19, %s244_s20  }
   0x8   :  { %235 = dma.done.wait [#allocation4], 128  }
   0x9   :  { %236 = vsyncadd [#allocation4], 4294967168 }
   0xa   :  { %237 = dma.done.wait [#allocation7], 4096  }
   0xb   :  { %238 = vsyncadd [#allocation7], 4294963200  ;;  %v267_v0 = vld [vmem:[#allocation3] sm:$0xff]  ;;  %v78_v4 = vld [vmem:[#allocation6 + $0x70] sm:$0xff]  ;;  %s245_s0 = smov [#allocation8]   ;;  %s145_s23 = sshll.u32 %s277_s2, 4  ;;  %s146_s23 = int_to_ptr.hbm [resolvable:$true] %s145_s23 }
   0xc   :  { %v79_v1 = vld [vmem:[#allocation6 + $0x78] sm:$0xff]  ;;  %v47_v3 = vmul.f32 %v267_v0, %v267_v0  ;;  %v94_v5 = vld [vmem:[#allocation6 + $0xf0] sm:$0xff]  ;;  %v77_v6 = vld [vmem:[#allocation6 + $0x68] sm:$0xff]  ;;  %s143_s1 = sshll.u32 %s245_s0, 4  ;;  %s144_s1 = int_to_ptr.vmem [resolvable:$true] %s143_s1 }
   0xd   :  { %v95_v2 = vld [vmem:[#allocation6 + $0xf8] sm:$0xff]  ;;  %96 = vmatpush.xpose.msra.mxu0 %v79_v1  ;;  %v93_v7 = vld [vmem:[#allocation6 + $0xe8] sm:$0xff]  ;;  %v76_v8 = vld [vmem:[#allocation6 + $0x60] sm:$0xff] }
   0xe   :  { %116 = vmatpush.xpose.msra.mxu1 %v95_v2  ;;  %48 = vadd.xlane.f32.xlu0 %v47_v3  ;;  %v92_v9 = vld [vmem:[#allocation6 + $0xe0] sm:$0xff]  ;;  %v75_v10 = vld [vmem:[#allocation6 + $0x58] sm:$0xff]  ;;  %v74_v12 = vld [vmem:[#allocation6 + $0x50] sm:$0xff] }
   0xf   :  { %v91_v11 = vld [vmem:[#allocation6 + $0xd8] sm:$0xff]  ;;  %v90_v13 = vld [vmem:[#allocation6 + $0xd0] sm:$0xff]  ;;  %v73_v14 = vld [vmem:[#allocation6 + $0x48] sm:$0xff] }
  0x10   :  { %v89_v15 = vld [vmem:[#allocation6 + $0xc8] sm:$0xff]  ;;  %v72_v16 = vld [vmem:[#allocation6 + $0x40] sm:$0xff]  ;;  %v71_v18 = vld [vmem:[#allocation6 + $0x38] sm:$0xff] }
  0x11   :  { %97 = vmatpush.xpose.msra.mxu0 %v78_v4  ;;  %v88_v17 = vld [vmem:[#allocation6 + $0xc0] sm:$0xff]  ;;  %v87_v19 = vld [vmem:[#allocation6 + $0xb8] sm:$0xff]  ;;  %v70_v20 = vld [vmem:[#allocation6 + $0x30] sm:$0xff] }
  0x12   :  { %117 = vmatpush.xpose.msra.mxu1 %v94_v5  ;;  %v86_v21 = vld [vmem:[#allocation6 + $0xb0] sm:$0xff]  ;;  %v69_v22 = vld [vmem:[#allocation6 + $0x28] sm:$0xff]  ;;  %v68_v24 = vld [vmem:[#allocation6 + $0x20] sm:$0xff] }
  0x13   :  { %v85_v23 = vld [vmem:[#allocation6 + $0xa8] sm:$0xff]  ;;  %v84_v25 = vld [vmem:[#allocation6 + $0xa0] sm:$0xff]  ;;  %v67_v26 = vld [vmem:[#allocation6 + $0x18] sm:$0xff] }
  0x14   :  { %v83_v27 = vld [vmem:[#allocation6 + $0x98] sm:$0xff]  ;;  %v66_v28 = vld [vmem:[#allocation6 + $0x10] sm:$0xff]  ;;  %v65_v30 = vld [vmem:[#allocation6 + $0x8] sm:$0xff] }
  0x15   :  { %98 = vmatpush.xpose.msra.mxu0 %v77_v6  ;;  %v82_v29 = vld [vmem:[#allocation6 + $0x90] sm:$0xff]  ;;  %v81_v31 = vld [vmem:[#allocation6 + $0x88] sm:$0xff]  ;;  %v64_v32 = vld [vmem:[#allocation6] sm:$0xff] }
  0x16   :  { %118 = vmatpush.xpose.msra.mxu1 %v93_v7  ;;  %v80_v33 = vld [vmem:[#allocation6 + $0x80] sm:$0xff] }
  0x19   :  { %99 = vmatpush.xpose.msra.mxu0 %v76_v8 }
  0x1a   :  { %119 = vmatpush.xpose.msra.mxu1 %v92_v9 }
  0x1d   :  { %100 = vmatpush.xpose.msra.mxu0 %v75_v10 }
  0x1e   :  { %120 = vmatpush.xpose.msra.mxu1 %v91_v11 }
  0x21   :  { %101 = vmatpush.xpose.msra.mxu0 %v74_v12 }
  0x22   :  { %121 = vmatpush.xpose.msra.mxu1 %v90_v13 }
  0x25   :  { %102 = vmatpush.xpose.msra.mxu0 %v73_v14 }
  0x26   :  { %122 = vmatpush.xpose.msra.mxu1 %v89_v15 }
  0x29   :  { %103 = vmatpush.xpose.msra.mxu0 %v72_v16 }
  0x2a   :  { %123 = vmatpush.xpose.msra.mxu1 %v88_v17 }
  0x2d   :  { %104 = vmatpush.xpose.msra.mxu0 %v71_v18 }
  0x2e   :  { %124 = vmatpush.xpose.msra.mxu1 %v87_v19 }
  0x31   :  { %105 = vmatpush.xpose.msra.mxu0 %v70_v20 }
  0x32   :  { %125 = vmatpush.xpose.msra.mxu1 %v86_v21 }
  0x35   :  { %106 = vmatpush.xpose.msra.mxu0 %v69_v22 }
  0x36   :  { %126 = vmatpush.xpose.msra.mxu1 %v85_v23 }
  0x39   :  { %107 = vmatpush.xpose.msra.mxu0 %v68_v24 }
  0x3a   :  { %127 = vmatpush.xpose.msra.mxu1 %v84_v25 }
  0x3d   :  { %108 = vmatpush.xpose.msra.mxu0 %v67_v26 }
  0x3e   :  { %128 = vmatpush.xpose.msra.mxu1 %v83_v27 }
  0x41   :  { %109 = vmatpush.xpose.msra.mxu0 %v66_v28 }
  0x42   :  { %129 = vmatpush.xpose.msra.mxu1 %v82_v29 }
  0x45   :  { %110 = vmatpush.xpose.msra.mxu0 %v65_v30 }
  0x46   :  { %130 = vmatpush.xpose.msra.mxu1 %v81_v31 }
  0x49   :  { %111 = vmatpush.xpose.msra.mxu0 %v64_v32 }
  0x4a   :  { %131 = vmatpush.xpose.msra.mxu1 %v80_v33 }
  0x81   :  { %v49_v34 = vpop.xlane.xlu0 %48 }
  0x82   :  { %v50_v35 = vmax.f32 %v49_v34, 1e-24 }
  0x84   :  { %161 = vrsqrt.f32 %v50_v35  ;;  %vm57_vm1 = vweird.f32 %v50_v35 }
  0x8a   :  { %v162_v36 = vpop.eup %161 }
  0x8b   :  { %v52_v37 = vmul.f32 %v162_v36, %v50_v35  ;;  %vm58_vm0 = vweird.f32 %v162_v36 }
  0x8c   :  { %vm59_vm2 = vmor %vm57_vm1, %vm58_vm0 }
  0x8d   :  { %v53_v38 = vmul.f32 %v162_v36, %v52_v37 }
  0x8f   :  { %v54_v39 = vmul.f32 0.5, %v53_v38 }
  0x91   :  { %v55_v40 = vsub.f32 1.5, %v54_v39 }
  0x93   :  { %v56_v41 = vmul.f32 %v162_v36, %v55_v40 }
  0x95   :  { %v60_v42 = vsel %vm59_vm2, %v162_v36, %v56_v41 }
  0x96   :  { %v61_v43 = vmul.f32 %v60_v42, %v267_v0 }
  0x98   :  { %112 = vmatmul.f32.vlgmr.msra.gmra.mxu0 %v61_v43  ;;  %132 = vmatmul.f32.vlgmr.msra.gmra.mxu1 %v61_v43 }
 0x115   :  { %v113_v44 = vpop.f32.mrf.mxu0  ;;  %v133_v45 = vpop.f32.mrf.mxu1 }
 0x116   :  { %136 = vst [vmem:[#allocation8] sm:$0xff] %v113_v44 }
 0x117   :  { %137 = vst [vmem:[#allocation8 + $0x8] sm:$0xff] %v133_v45 }
 0x118   :  { %148 = dma.vmem_to_hbm [thread:$0]  %s144_s1, 256, %s146_s23, [#allocation5]  }
 0x119   :  { %239 = dma.done.wait [#allocation5], 256  }
 0x11a   :  { %240 = vsyncadd [#allocation5], 4294967040 }
 0x11b   :  { %153 = vsyncpa [#allocation4], 1 }
 0x11c   :  { %154 = vsyncpa [#allocation7], 1 }
 0x11d   :  { %155 = vsyncpa [#allocation5], 1 }

</bundles_post_ra>
